<compile_context>
chip_gen: v7x
topology: tpu7x:2x2x1
jax: 0.10.0
libtpu: 0.0.40
codegen_flags: <defaults>
</compile_context>

<pallas_src>
import functools

import jax
import jax.numpy as jnp
from jax.experimental import pallas as pl
from jax.experimental.pallas import tpu as pltpu

EPS = 1e-8
MAX_TILE_K = 4096
MAX_TILE_N = 1024


def _round_up(v, m):
    return (v + m - 1) // m * m


def _pick_tile(padded, candidates, cap):
    if padded <= cap:
        return padded
    return max(t for t in candidates if padded % t == 0)


def _sim_kernel(x_ref, p_ref, invn_ref, out_ref):
    """out[m, i-tile] = sum_k x[m, k-tile] @ p_t[k-tile, i-tile], then * invn.

    x_ref   : (M, d_pad)        bf16  full query slab, VMEM-resident (const idx)
    p_ref   : (TILE_K, TILE_N)  bf16  transposed dictionary slab (streamed)
    invn_ref: (1, TILE_N)       f32   precomputed 1 / max(||p_i||, eps)
    out_ref : (M, TILE_N)       f32   lane-dense output; doubles as accumulator
    """
    k = pl.program_id(1)
    tile_k = p_ref.shape[0]

    @pl.when(k == 0)
    def _():
        out_ref[...] = jnp.zeros_like(out_ref)

    start = pl.multiple_of(k * tile_k, tile_k)
    x_blk = x_ref[:, pl.ds(start, tile_k)]
    out_ref[...] += jnp.dot(x_blk, p_ref[...],
                            preferred_element_type=jnp.float32)

    @pl.when(k == pl.num_programs(1) - 1)
    def _():
        out_ref[...] = out_ref[...] * invn_ref[...]


@functools.partial(jax.jit, static_argnames=("tile_n", "tile_k"))
def _cosine_numerators(x_pad, p_t, inv_norms, tile_n, tile_k):
    """(M, n_pad) f32 = (x_m . p_i) / max(||p_i||, eps) for every column i."""
    m, d_pad = x_pad.shape
    _, n_pad = p_t.shape
    grid = (n_pad // tile_n, d_pad // tile_k)

    # Double-buffered working set (bytes), with headroom; cap for v7x (64 MiB).
    working = (2 * tile_k * tile_n * 2          # p_t stream (bf16) x2 buffers
               + 2 * m * d_pad * 2              # resident query (bf16)
               + 2 * tile_n * 4                 # invn row
               + 2 * m * tile_n * 4)            # output/accumulator
    vmem_limit = int(min(48 * 1024 * 1024,
                         max(32 * 1024 * 1024, 2 * working)))

    return pl.pallas_call(
        _sim_kernel,
        out_shape=jax.ShapeDtypeStruct((m, n_pad), jnp.float32),
        grid_spec=pltpu.PrefetchScalarGridSpec(
            num_scalar_prefetch=0,
            grid=grid,
            in_specs=[
                pl.BlockSpec((m, d_pad), lambda i, k: (0, 0)),     # query, resident
                pl.BlockSpec((tile_k, tile_n), lambda i, k: (k, i)),
                pl.BlockSpec((1, tile_n), lambda i, k: (0, i)),
            ],
            out_specs=pl.BlockSpec((m, tile_n), lambda i, k: (0, i)),
        ),
        compiler_params=pltpu.CompilerParams(
            dimension_semantics=("parallel", "arbitrary"),
            vmem_limit_bytes=vmem_limit),
    )(x_pad, p_t, inv_norms)


@functools.partial(jax.jit, static_argnames=("n_valid", "tile_n", "tile_k"))
def _lookup(x_flat, p_t, inv_norms, stacked, n_valid, tile_n, tile_k):
    """Device-side: cosine sims, per-row argmax, gather of winning patterns.

    x_flat: (M, d) f32 flattened queries.
    Returns (best_patterns (M, *shape), idx (M,), sims (M, n_valid)).
    """
    m, d = x_flat.shape
    d_pad, n_pad = p_t.shape

    x_norm = jnp.sqrt(jnp.sum(x_flat * x_flat, axis=1, keepdims=True))  # (M,1)
    inv_x = 1.0 / jnp.maximum(x_norm, EPS)

    x_pad = jnp.zeros((m, d_pad), jnp.bfloat16)
    x_pad = x_pad.at[:, :d].set(x_flat.astype(jnp.bfloat16))

    dots = _cosine_numerators(x_pad, p_t, inv_norms, tile_n, tile_k)   # (M, n_pad)
    sims = dots * inv_x                                                # full cosine

    valid = jnp.arange(n_pad) < n_valid
    masked = jnp.where(valid[None, :], sims, -jnp.inf)
    idx = jnp.argmax(masked, axis=1)                                   # (M,)
    best = jnp.take(stacked, idx, axis=0)                              # (M, *shape)
    return best, idx, sims[:, :n_valid]


class NeuralDictPallas:
    """JAX/Pallas re-implementation of NeuralDict."""

    def __init__(self, classes=False, pattern_dtype=jnp.bfloat16):
        self.patterns = []                 # list of jnp arrays (original shape, f32)
        self.is_classes = classes
        if self.is_classes is True:
            self.key_classes = []
        self._pattern_dtype = pattern_dtype
        self._dirty = True
        self._cache = None

    def add(self, key, key_class=None):
        self.patterns.append(jnp.asarray(key, dtype=jnp.float32))
        if self.is_classes is True:
            self.key_classes.append(key_class)
        self._dirty = True

    # -- cached, device-resident dictionary -----------------------------------
    def _build_cache(self):
        n = len(self.patterns)
        d = int(self.patterns[0].size)

        stacked = jnp.stack(self.patterns, axis=0)            # (n, *shape) f32
        flat = stacked.reshape(n, d)                          # (n, d)     f32
        norms = jnp.sqrt(jnp.sum(flat * flat, axis=1))        # (n,)       f32
        inv_norms = 1.0 / jnp.maximum(norms, EPS)

        # Pad to the layout grain only (not to the tile size), then choose tile
        # sizes as divisors of the padded extents.
        d_pad = _round_up(d, 512)
        n_pad = _round_up(n, 128)
        tile_k = _pick_tile(d_pad, (4096, 2048, 1024, 512), MAX_TILE_K)
        tile_n = _pick_tile(n_pad, (1024, 512, 256, 128), MAX_TILE_N)

        p_t = jnp.zeros((d_pad, n_pad), self._pattern_dtype)
        p_t = p_t.at[:d, :n].set(flat.T.astype(self._pattern_dtype))
        invn = jnp.zeros((1, n_pad), jnp.float32).at[0, :n].set(inv_norms)

        self._cache = dict(stacked=stacked, p_t=p_t, inv_norms=invn,
                           tile_n=tile_n, tile_k=tile_k, n=n, d=d)
        self._dirty = False

    def _run(self, x_flat):
        if self._dirty:
            self._build_cache()
        c = self._cache
        return _lookup(x_flat, c["p_t"], c["inv_norms"], c["stacked"],
                       c["n"], c["tile_n"], c["tile_k"])

    # -- public API ------------------------------------------------------------
    def similarities(self, x):
        x_flat = jnp.asarray(x, jnp.float32).reshape(1, -1)
        _, _, sims = self._run(x_flat)
        return sims[0]

    def forward(self, x):
        x_flat = jnp.asarray(x, jnp.float32).reshape(1, -1)
        best, _, _ = self._run(x_flat)
        return best[0]                                 # device array, no host sync

    def forward_batch(self, xs):
        """xs: (B, *pattern_shape) -> (B, *pattern_shape) best patterns."""
        xs = jnp.asarray(xs, jnp.float32)
        b = xs.shape[0]
        best, _, _ = self._run(xs.reshape(b, -1))
        return best

    __call__ = forward


if __name__ == "__main__":
    key = jax.random.PRNGKey(0)

    # Small shapes consistent with an NCHW conv-style input.
    x_shape = (2, 4, 16, 16)
    n_patterns = 5

    nd = NeuralDictPallas(classes=True)
    keys = jax.random.split(key, n_patterns + 2)
    for i in range(n_patterns):
        pattern = jax.random.normal(keys[i], x_shape, dtype=jnp.float32)
        nd.add(pattern, key_class=i)

    x = jax.random.normal(keys[-2], x_shape, dtype=jnp.float32)

    best_pattern = nd(x)
    best_pattern = jax.block_until_ready(best_pattern)

    # Pure-JAX f32 reference of the same semantics.
    x_flat = x.reshape(-1)
    x_n = jnp.maximum(jnp.linalg.norm(x_flat), EPS)
    ref_sims = jnp.stack([
        jnp.dot(x_flat, p.reshape(-1)) /
        (x_n * jnp.maximum(jnp.linalg.norm(p.reshape(-1)), EPS))
        for p in nd.patterns
    ])

    sims = nd.similarities(x)
    assert sims.shape == (n_patterns,)
    assert bool(jnp.allclose(sims, ref_sims, atol=5e-3)), (sims, ref_sims)

    k_idx = int(jnp.argmax(sims))
    # The kernel's pick must be as similar (within bf16 tolerance) as the
    # f32 reference best — robust to near-ties under the dtype downcast.
    assert float(jnp.max(ref_sims)) - float(ref_sims[k_idx]) <= 1e-3
    assert best_pattern.shape == x_shape
    assert bool(jnp.allclose(best_pattern, nd.patterns[k_idx]))

    # Batched path reuses the same kernel as a GEMM; must agree with per-query.
    xb = jax.random.normal(keys[-1], (3,) + x_shape, dtype=jnp.float32)
    best_b = jax.block_until_ready(nd.forward_batch(xb))
    assert best_b.shape == (3,) + x_shape
    for b in range(3):
        assert bool(jnp.allclose(best_b[b], nd(xb[b])))

    print("KERNEL_OK")
</pallas_src>

<mosaic_0001>
module attributes {stable_mosaic.version = 11 : i64} {
  func.func @_sim_kernel(%arg0: i32, %arg1: i32, %arg2: memref<1x2048xbf16, #tpu.memory_space<vmem>>, %arg3: memref<2048x128xbf16, #tpu.memory_space<vmem>>, %arg4: memref<1x128xf32, #tpu.memory_space<vmem>>, %arg5: memref<1x128xf32, #tpu.memory_space<vmem>>) attributes {dimension_semantics = [#tpu.dimension_semantics<parallel>, #tpu.dimension_semantics<arbitrary>], iteration_bounds = array<i64: 1, 1>, scalar_prefetch = 0 : i64, scratch_operands = 0 : i64, tpu.core_type = #tpu.core_type<tc>, window_params = [{pipeline_mode = #tpu.pipeline_mode<synchronous>, transform_indices = @transform_0, window_bounds = array<i64: 1, 2048>}, {transform_indices = @transform_1, window_bounds = array<i64: 2048, 128>}, {transform_indices = @transform_2, window_bounds = array<i64: 1, 128>}, {transform_indices = @transform_3, window_bounds = array<i64: 1, 128>}]} {
    %c0_i32 = arith.constant 0 : i32
    %0 = arith.cmpi eq, %arg1, %c0_i32 : i32
    %1 = arith.extui %0 : i1 to i32
    %c0_i32_0 = arith.constant 0 : i32
    %2 = arith.cmpi ne, %1, %c0_i32_0 : i32
    scf.if %2 {
      %cst_9 = arith.constant 0.000000e+00 : f32
      %15 = vector.broadcast %cst_9 : f32 to vector<1x128xf32>
      %c0_10 = arith.constant 0 : index
      %c0_11 = arith.constant 0 : index
      %16 = vector.load %arg5[%c0_10, %c0_11] : memref<1x128xf32, #tpu.memory_space<vmem>>, vector<1x128xf32>
      tpu.vector_store %arg5[%c0_10, %c0_11], %15 {strides = array<i32>} : memref<1x128xf32, #tpu.memory_space<vmem>>, vector<1x128xf32>,
    } else {
    }
    %c2048_i32 = arith.constant 2048 : i32
    %3 = arith.muli %arg1, %c2048_i32 : i32
    %4 = tpu.assume_multiple %3, 2048 : i32
    %c0 = arith.constant 0 : index
    %5 = arith.index_cast %4 : i32 to index
    %6 = vector.load %arg2[%c0, %5] : memref<1x2048xbf16, #tpu.memory_space<vmem>>, vector<1x2048xbf16>
    %c0_1 = arith.constant 0 : index
    %c0_2 = arith.constant 0 : index
    %7 = vector.load %arg5[%c0_1, %c0_2] : memref<1x128xf32, #tpu.memory_space<vmem>>, vector<1x128xf32>
    %c0_3 = arith.constant 0 : index
    %c0_4 = arith.constant 0 : index
    %8 = vector.load %arg3[%c0_3, %c0_4] : memref<2048x128xbf16, #tpu.memory_space<vmem>>, vector<2048x128xbf16>
    %cst = arith.constant dense<0.000000e+00> : vector<1x128xf32>
    %9 = tpu.matmul %6, %8, %cst {dimension_numbers = #tpu.dot_dimension_numbers<[1], [0], [0], [1], [0, 0, 1, 1], [], []>} : vector<1x2048xbf16>, vector<2048x128xbf16>, vector<1x128xf32> -> vector<1x128xf32>
    %10 = arith.addf %7, %9 : vector<1x128xf32>
    %c0_5 = arith.constant 0 : index
    %c0_6 = arith.constant 0 : index
    %11 = vector.load %arg5[%c0_5, %c0_6] : memref<1x128xf32, #tpu.memory_space<vmem>>, vector<1x128xf32>
    tpu.vector_store %arg5[%c0_5, %c0_6], %10 {strides = array<i32>} : memref<1x128xf32, #tpu.memory_space<vmem>>, vector<1x128xf32>,
    %c0_i32_7 = arith.constant 0 : i32
    %12 = arith.cmpi eq, %arg1, %c0_i32_7 : i32
    %13 = arith.extui %12 : i1 to i32
    %c0_i32_8 = arith.constant 0 : i32
    %14 = arith.cmpi ne, %13, %c0_i32_8 : i32
    scf.if %14 {
      %c0_9 = arith.constant 0 : index
      %c0_10 = arith.constant 0 : index
      %15 = vector.load %arg5[%c0_9, %c0_10] : memref<1x128xf32, #tpu.memory_space<vmem>>, vector<1x128xf32>
      %c0_11 = arith.constant 0 : index
      %c0_12 = arith.constant 0 : index
      %16 = vector.load %arg4[%c0_11, %c0_12] : memref<1x128xf32, #tpu.memory_space<vmem>>, vector<1x128xf32>
      %17 = arith.mulf %15, %16 : vector<1x128xf32>
      %c0_13 = arith.constant 0 : index
      %c0_14 = arith.constant 0 : index
      %18 = vector.load %arg5[%c0_13, %c0_14] : memref<1x128xf32, #tpu.memory_space<vmem>>, vector<1x128xf32>
      tpu.vector_store %arg5[%c0_13, %c0_14], %17 {strides = array<i32>} : memref<1x128xf32, #tpu.memory_space<vmem>>, vector<1x128xf32>,
    } else {
    }
    return
  }
  func.func @transform_0(%arg0: i32, %arg1: i32) -> (i32, i32) {
    %c0_i32 = arith.constant 0 : i32
    %c0_i32_0 = arith.constant 0 : i32
    %c0_i32_1 = arith.constant 0 : i32
    return %c0_i32, %c0_i32_0 : i32, i32
  }
  func.func @transform_1(%arg0: i32, %arg1: i32) -> (i32, i32) {
    %c0_i32 = arith.constant 0 : i32
    return %arg1, %arg0 : i32, i32
  }
  func.func @transform_2(%arg0: i32, %arg1: i32) -> (i32, i32) {
    %c0_i32 = arith.constant 0 : i32
    %c0_i32_0 = arith.constant 0 : i32
    return %c0_i32, %arg0 : i32, i32
  }
  func.func @transform_3(%arg0: i32, %arg1: i32) -> (i32, i32) {
    %c0_i32 = arith.constant 0 : i32
    %c0_i32_0 = arith.constant 0 : i32
    return %c0_i32, %arg0 : i32, i32
  }
}

</mosaic_0001>

<bundles_post_ra>
// kernel: _cosine_numerators.1
= control target key start
LH: loop header
LB: loop body
LE: loop exit
PB: predicated region body
PF: predicated region fallthrough
CT: control target
= control target key end

     0   :  { %8 = vsyncpa [#allocation3], 0  ;;  %s2150_s0 = inlined_call_operand.hbm [shape: bf16[1,2048], index: 0, kind: input, shape index: {}]   ;;  %s2151_s1 = inlined_call_operand.hbm [shape: bf16[2048,128], index: 1, kind: input, shape index: {}]   ;;  %s2152_s2 = inlined_call_operand.vmem [shape: f32[1,128], index: 2, kind: input, shape index: {}]   ;;  %s2153_s3 = inlined_call_operand.hbm [shape: f32[1,128], index: 3, kind: output, shape index: {}]  }
   0x1   :  { %9 = vsyncpa [#allocation6], 0 }
   0x2   :  { %10 = vsyncpa [#allocation4], 0  ;;  %s2053_s12 = smov [#allocation2]   ;;  %s2054_s14 = smov [#allocation5]  }
   0x3   :  { %s17_s13 = sshll.u32 %s2053_s12, 4  ;;  %s26_s15 = sshll.u32 %s2054_s14, 4  ;;  %s18_s13 = int_to_ptr.vmem [resolvable:$true] %s17_s13  ;;  %s2080_s15 = int_to_ptr.vmem [resolvable:$true] %s26_s15 }
   0x4   :  { %s1981_s18 = scalar_lea.hbm %s2150_s0, 256 }
   0x5   :  { %p1982_p0 = scmp.ne.s32.totalorder %s2150_s0, %s1981_s18  ;;  %p1985_p1 = scmp.lt.u32.totalorder %s1981_s18, %s2150_s0 }
   0x7   :  { %p1987_p2 = pnand %p1985_p1, %p1982_p0 }
   0x9   :  { %1990 = shalt.err (!%p1987_p2)
}
   0xa   :  { %s1991_s23 = scalar_lea.vmem %s18_s13, 256  ;;  %p1996_p4 = scmp.lt.s32.totalorder %s18_s13, %s18_s13 }
   0xb   :  { %p1992_p3 = scmp.ne.s32.totalorder %s18_s13, %s1991_s23  ;;  %p1997_p5 = scmp.lt.s32.totalorder %s1991_s23, %s1991_s23 }
   0xd   :  { %p1998_p6 = por %p1997_p5, %p1996_p4 }
   0xf   :  { %p1999_p7 = pnand %p1998_p6, %p1992_p3 }
  0x11   :  { %2002 = shalt.err (!%p1999_p7)
}
  0x12   :  { %20 = dma.hbm_to_vmem [thread:$0]  %s2150_s0, 256, %s18_s13, [#allocation3]  }
  0x13   :  { %s2003_s28 = scalar_lea.hbm %s2151_s1, 16384 }
  0x14   :  { %p2004_p8 = scmp.ne.s32.totalorder %s2151_s1, %s2003_s28  ;;  %p2007_p9 = scmp.lt.u32.totalorder %s2003_s28, %s2151_s1 }
  0x16   :  { %p2009_p10 = pnand %p2007_p9, %p2004_p8 }
  0x18   :  { %2012 = shalt.err (!%p2009_p10)
}
  0x19   :  { %s2013_s6 = scalar_lea.vmem %s2080_s15, 16384  ;;  %p2018_p12 = scmp.lt.s32.totalorder %s2080_s15, %s2080_s15 }
  0x1a   :  { %p2014_p11 = scmp.ne.s32.totalorder %s2080_s15, %s2013_s6  ;;  %p2019_p13 = scmp.lt.s32.totalorder %s2013_s6, %s2013_s6 }
  0x1c   :  { %p2020_p0 = por %p2019_p13, %p2018_p12 }
  0x1e   :  { %p2021_p1 = pnand %p2020_p0, %p2014_p11 }
  0x20   :  { %2024 = shalt.err (!%p2021_p1)
}
  0x21   :  { %s2055_s0 = smov 64   ;;  %s2056_s7 = smov 4  }
  0x22   :  { %32 = dma.hbm_to_vmem [thread:$0]  %s2151_s1, 16384, %s2080_s15, [#allocation6], %s2055_s0, %s2055_s0, %s2056_s7  }
  0x23   :  { %2047 = dma.done.wait [#allocation3], 256  }
  0x24   :  { %2048 = vsyncadd [#allocation3], 4294967040 }
  0x25   :  { %2049 = dma.done.wait [#allocation6], 16384  }
  0x26   :  { %2050 = vsyncadd [#allocation6], 4294950912  ;;  %v1851_v0 = vld [vmem:[#allocation5 + $0x40] sm:$0xff]   ;;  %v1855_v4 = vld [vmem:[#allocation5 + $0x48] sm:$0xff]   ;;  %v2057_v22 = vmov 1966171168   ;;  %v316_v24 = vlaneseq }
  0x27   :  { %v1852_v1 = vld [vmem:[#allocation5 + $0xc0] sm:$0xff]   ;;  %1668 = vmatprep.subr.bf16.mxu0 %v1851_v0  ;;  %v1856_v5 = vld [vmem:[#allocation5 + $0xc8] sm:$0xff]   ;;  %v1859_v8 = vld [vmem:[#allocation5 + $0x50] sm:$0xff]   ;;  %v314_v23 = vunpack.c.l.s4 %v2057_v22  ;;  %s2059_s11 = smov [#allocation7]  }
  0x28   :  { %v1853_v2 = vld [vmem:[#allocation5] sm:$0xff]   ;;  %1690 = vmatprep.subr.bf16.mxu1 %v1852_v1  ;;  %v1857_v6 = vld [vmem:[#allocation5 + $0x8] sm:$0xff]   ;;  %v1860_v9 = vld [vmem:[#allocation5 + $0xd0] sm:$0xff]   ;;  %v317_v30 = vshrl.u32 %v316_v24, 7  ;;  %s1529_s12 = sshll.u32 %s2059_s11, 4  ;;  %s1530_s12 = int_to_ptr.vmem [resolvable:$true] %s1529_s12 }
  0x29   :  { %v1854_v3 = vld [vmem:[#allocation5 + $0x80] sm:$0xff]   ;;  %1669 = vmatpush3.bf16.msra.mxu0 %v1853_v2  ;;  %v1858_v7 = vld [vmem:[#allocation5 + $0x88] sm:$0xff]   ;;  %v1861_v10 = vld [vmem:[#allocation5 + $0x10] sm:$0xff]   ;;  %v315_v29 = vunpack.c.0.s8 %v314_v23  ;;  %s2025_s13 = scalar_lea.vmem %s1530_s12, 16  ;;  %s2029_s14 = scalar_lea.vmem %s1530_s12, 32 }
  0x2a   :  { %1691 = vmatpush3.bf16.msra.mxu1 %v1854_v3  ;;  %1670 = vmatprep.subr.bf16.mxu0 %v1855_v4  ;;  %v1862_v11 = vld [vmem:[#allocation5 + $0x90] sm:$0xff]   ;;  %v1863_v12 = vld [vmem:[#allocation5 + $0x58] sm:$0xff]   ;;  %v1867_v16 = vld [vmem:[#allocation5 + $0x60] sm:$0xff]   ;;  %p2026_p2 = scmp.ne.s32.totalorder %s1530_s12, %s2025_s13  ;;  %p2030_p3 = scmp.lt.s32.totalorder %s1530_s12, %s1530_s12 }
  0x2b   :  { %1692 = vmatprep.subr.bf16.mxu1 %v1856_v5  ;;  %v1864_v13 = vld [vmem:[#allocation5 + $0xd8] sm:$0xff]   ;;  %v1868_v17 = vld [vmem:[#allocation5 + $0xe0] sm:$0xff]   ;;  %v1871_v20 = vld [vmem:[#allocation5 + $0x68] sm:$0xff]   ;;  %v2111_v35 = vsub.s32 %v315_v29, %v317_v30  ;;  %p2031_p4 = scmp.lt.s32.totalorder %s2029_s14, %s2025_s13 }
  0x2c   :  { %v1865_v14 = vld [vmem:[#allocation5 + $0x18] sm:$0xff]   ;;  %v1869_v18 = vld [vmem:[#allocation5 + $0x20] sm:$0xff]   ;;  %v1872_v21 = vld [vmem:[#allocation5 + $0xe8] sm:$0xff]  }
  0x2d   :  { %1671 = vmatpush3.bf16.msra.mxu0 %v1857_v6  ;;  %v1866_v15 = vld [vmem:[#allocation5 + $0x98] sm:$0xff]   ;;  %v1870_v19 = vld [vmem:[#allocation5 + $0xa0] sm:$0xff]   ;;  %v1873_v25 = vld [vmem:[#allocation5 + $0x28] sm:$0xff]   ;;  %p2032_p5 = por %p2031_p4, %p2030_p3 }
  0x2e   :  { %1693 = vmatpush3.bf16.msra.mxu1 %v1858_v7  ;;  %1672 = vmatprep.subr.bf16.mxu0 %v1859_v8  ;;  %v1874_v26 = vld [vmem:[#allocation5 + $0xa8] sm:$0xff]   ;;  %v1875_v27 = vld [vmem:[#allocation5 + $0x70] sm:$0xff]   ;;  %v1879_v33 = vld [vmem:[#allocation5 + $0x78] sm:$0xff]  }
  0x2f   :  { %1694 = vmatprep.subr.bf16.mxu1 %v1860_v9  ;;  %v1876_v28 = vld [vmem:[#allocation5 + $0xf0] sm:$0xff]   ;;  %v1880_v34 = vld [vmem:[#allocation5 + $0xf8] sm:$0xff]   ;;  %v1884_v41 = vld [vmem:[#allocation5 + $0x140] sm:$0xff]   ;;  %p2033_p6 = pnand %p2032_p5, %p2026_p2 }
  0x30   :  { %v1877_v31 = vld [vmem:[#allocation5 + $0x30] sm:$0xff]   ;;  %v1881_v36 = vld [vmem:[#allocation5 + $0x38] sm:$0xff]   ;;  %v1885_v42 = vld [vmem:[#allocation5 + $0x1c0] sm:$0xff]  }
  0x31   :  { %1673 = vmatpush3.bf16.msra.mxu0 %v1861_v10  ;;  %v1878_v32 = vld [vmem:[#allocation5 + $0xb0] sm:$0xff]   ;;  %v1882_v37 = vld [vmem:[#allocation5 + $0xb8] sm:$0xff]   ;;  %v1886_v47 = vld [vmem:[#allocation5 + $0x100] sm:$0xff]  }
  0x32   :  { %1695 = vmatpush3.bf16.msra.mxu1 %v1862_v11  ;;  %1674 = vmatprep.subr.bf16.mxu0 %v1863_v12  ;;  %v51_v38 = vld [vmem:[#allocation2] sm:$0xff]  ;;  %v1888_v50 = vld [vmem:[#allocation5 + $0x148] sm:$0xff]   ;;  %v1887_v52 = vld [vmem:[#allocation5 + $0x180] sm:$0xff]  }
  0x33   :  { %1696 = vmatprep.subr.bf16.mxu1 %v1864_v13  ;;  %v312_v39 = vcombine.high %v51_v38, %v51_v38  ;;  %v319_v40 = vrot.slane %v51_v38, %v2111_v35  ;;  %v1889_v54 = vld [vmem:[#allocation5 + $0x1c8] sm:$0xff]   ;;  %v1892_v57 = vld [vmem:[#allocation5 + $0x150] sm:$0xff]   ;;  %v1896_v61 = vld [vmem:[#allocation5 + $0x158] sm:$0xff]  }
  0x34   :  { %v1890_v55 = vld [vmem:[#allocation5 + $0x108] sm:$0xff]   ;;  %v1893_v59 = vld [vmem:[#allocation5 + $0x1d0] sm:$0xff]   ;;  %v1897_v63 = vld [vmem:[#allocation5 + $0x1d8] sm:$0xff]  }
  0x35   :  { %1675 = vmatpush3.bf16.msra.mxu0 %v1865_v14  ;;  %v327_v43 = vcombine.high %v319_v40, %v319_v40  ;;  %v335_v44 = vrot.slane %v319_v40, %v2111_v35  ;;  %v2116_v45 = vrot.slane %v312_v39, %v2111_v35  ;;  %v1891_v58 = vld [vmem:[#allocation5 + $0x188] sm:$0xff]   ;;  %v1894_v60 = vld [vmem:[#allocation5 + $0x110] sm:$0xff]   ;;  %v1898_v0 = vld [vmem:[#allocation5 + $0x118] sm:$0xff]  }
  0x36   :  { %1697 = vmatpush3.bf16.msra.mxu1 %v1866_v15  ;;  %1676 = vmatprep.subr.bf16.mxu0 %v1867_v16  ;;  %v1895_v62 = vld [vmem:[#allocation5 + $0x190] sm:$0xff]   ;;  %v1900_v1 = vld [vmem:[#allocation5 + $0x160] sm:$0xff]   ;;  %v1899_v2 = vld [vmem:[#allocation5 + $0x198] sm:$0xff]  }
  0x37   :  { %1698 = vmatprep.subr.bf16.mxu1 %v1868_v17  ;;  %v349_v46 = vrot.slane %v327_v43, %v2111_v35  ;;  %v328_v48 = vcombine.high %v2116_v45, %v2116_v45  ;;  %v357_v49 = vcombine.high %v335_v44, %v335_v44  ;;  %v1901_v3 = vld [vmem:[#allocation5 + $0x1e0] sm:$0xff]   ;;  %v1904_v5 = vld [vmem:[#allocation5 + $0x168] sm:$0xff]   ;;  %v1908_v9 = vld [vmem:[#allocation5 + $0x170] sm:$0xff]   ;;  %v342_v17 = vrot.slane %v2116_v45, %v2111_v35 }
  0x38   :  { %v1902_v4 = vld [vmem:[#allocation5 + $0x120] sm:$0xff]   ;;  %v1905_v7 = vld [vmem:[#allocation5 + $0x1e8] sm:$0xff]   ;;  %v1909_v11 = vld [vmem:[#allocation5 + $0x1f0] sm:$0xff]  }
  0x39   :  { %1677 = vmatpush3.bf16.msra.mxu0 %v1869_v18  ;;  %1226 = vmatprep.mubr.bf16.mxu0 %v349_v46  ;;  %v359_v51 = vcombine.high %v349_v46, %v349_v46  ;;  %v356_v53 = vrot.slane %v328_v48, %v2111_v35  ;;  %v1903_v6 = vld [vmem:[#allocation5 + $0x1a0] sm:$0xff]   ;;  %v1906_v8 = vld [vmem:[#allocation5 + $0x128] sm:$0xff]   ;;  %v1910_v12 = vld [vmem:[#allocation5 + $0x130] sm:$0xff]   ;;  %v358_v22 = vcombine.high %v342_v17, %v342_v17 }
  0x3a   :  { %1699 = vmatpush3.bf16.msra.mxu1 %v1870_v19  ;;  %1678 = vmatprep.subr.bf16.mxu0 %v1871_v20  ;;  %v1907_v10 = vld [vmem:[#allocation5 + $0x1a8] sm:$0xff]   ;;  %v1912_v13 = vld [vmem:[#allocation5 + $0x178] sm:$0xff]   ;;  %v1911_v14 = vld [vmem:[#allocation5 + $0x1b0] sm:$0xff]  }
  0x3b   :  { %1700 = vmatprep.subr.bf16.mxu1 %v1872_v21  ;;  %1266 = vmatprep.mubr.bf16.mxu1 %v359_v51  ;;  %v360_v56 = vcombine.high %v356_v53, %v356_v53  ;;  %v1913_v15 = vld [vmem:[#allocation5 + $0x1f8] sm:$0xff]   ;;  %v1916_v18 = vld [vmem:[#allocation5 + $0x240] sm:$0xff]   ;;  %v1920_v23 = vld [vmem:[#allocation5 + $0x248] sm:$0xff]  }
  0x3c   :  { %v1914_v16 = vld [vmem:[#allocation5 + $0x138] sm:$0xff]   ;;  %v1917_v20 = vld [vmem:[#allocation5 + $0x2c0] sm:$0xff]   ;;  %v1925_v29 = vld [vmem:[#allocation5 + $0x2d0] sm:$0xff]  }
  0x3d   :  { %1679 = vmatpush3.bf16.msra.mxu0 %v1873_v25  ;;  %v1915_v19 = vld [vmem:[#allocation5 + $0x1b8] sm:$0xff]   ;;  %v1918_v21 = vld [vmem:[#allocation5 + $0x200] sm:$0xff]   ;;  %v1921_v25 = vld [vmem:[#allocation5 + $0x2c8] sm:$0xff]  }
  0x3e   :  { %1701 = vmatpush3.bf16.msra.mxu1 %v1874_v26  ;;  %1680 = vmatprep.subr.bf16.mxu0 %v1875_v27  ;;  %v1919_v24 = vld [vmem:[#allocation5 + $0x280] sm:$0xff]   ;;  %v1922_v26 = vld [vmem:[#allocation5 + $0x208] sm:$0xff]   ;;  %v1924_v27 = vld [vmem:[#allocation5 + $0x250] sm:$0xff]  }
  0x3f   :  { %1702 = vmatprep.subr.bf16.mxu1 %v1876_v28  ;;  %v1923_v28 = vld [vmem:[#allocation5 + $0x288] sm:$0xff]   ;;  %v1926_v30 = vld [vmem:[#allocation5 + $0x210] sm:$0xff]   ;;  %v1933_v38 = vld [vmem:[#allocation5 + $0x2e0] sm:$0xff]  }
  0x40   :  { %v1934_v39 = vld [vmem:[#allocation5 + $0x220] sm:$0xff]   ;;  %v1936_v40 = vld [vmem:[#allocation5 + $0x268] sm:$0xff]   ;;  %v1941_v46 = vld [vmem:[#allocation5 + $0x2f0] sm:$0xff]  }
  0x41   :  { %1681 = vmatpush3.bf16.msra.mxu0 %v1877_v31  ;;  %v1928_v31 = vld [vmem:[#allocation5 + $0x258] sm:$0xff]   ;;  %v1938_v43 = vld [vmem:[#allocation5 + $0x228] sm:$0xff]  }
  0x42   :  { %1703 = vmatpush3.bf16.msra.mxu1 %v1878_v32  ;;  %1682 = vmatprep.subr.bf16.mxu0 %v1879_v33  ;;  %v1927_v32 = vld [vmem:[#allocation5 + $0x290] sm:$0xff]   ;;  %v1929_v33 = vld [vmem:[#allocation5 + $0x2d8] sm:$0xff]   ;;  %v1939_v45 = vld [vmem:[#allocation5 + $0x2a8] sm:$0xff]  }
  0x43   :  { %1704 = vmatprep.subr.bf16.mxu1 %v1880_v34  ;;  %v1930_v34 = vld [vmem:[#allocation5 + $0x218] sm:$0xff]  }
  0x44   :  { %v1944_v48 = vld [vmem:[#allocation5 + $0x278] sm:$0xff]  }
  0x45   :  { %1683 = vmatpush3.bf16.msra.mxu0 %v1881_v36  ;;  %v1932_v36 = vld [vmem:[#allocation5 + $0x260] sm:$0xff]   ;;  %v52_v51 = vld [vmem:[#allocation2 + $0x8] sm:$0xff] }
  0x46   :  { %1705 = vmatpush3.bf16.msra.mxu1 %v1882_v37  ;;  %1712 = vmatprep.subr.bf16.mxu0 %v1884_v41  ;;  %v1931_v37 = vld [vmem:[#allocation5 + $0x298] sm:$0xff]   ;;  %v1935_v41 = vld [vmem:[#allocation5 + $0x2a0] sm:$0xff]  }
  0x47   :  { %1734 = vmatprep.subr.bf16.mxu1 %v1885_v42  ;;  %v1937_v42 = vld [vmem:[#allocation5 + $0x2e8] sm:$0xff]  }
  0x48   :  { %1227 = vmatmul.mubr.bf16.vlgmr.msra.gmra.mrb[0].mxu0 %v335_v44  ;;  %v1940_v44 = vld [vmem:[#allocation5 + $0x270] sm:$0xff]  }
  0x49   :  { %1713 = vmatpush3.bf16.msra.mxu0 %v1886_v47  ;;  %1267 = vmatmul.mubr.bf16.vlgmr.msra.gmra.mrb[0].mxu1 %v357_v49  ;;  %v1942_v47 = vld [vmem:[#allocation5 + $0x230] sm:$0xff]  }
  0x4a   :  { %1714 = vmatprep.subr.bf16.mxu0 %v1888_v50  ;;  %1735 = vmatpush3.bf16.msra.mxu1 %v1887_v52  ;;  %v1943_v49 = vld [vmem:[#allocation5 + $0x2b0] sm:$0xff]   ;;  %v1945_v50 = vld [vmem:[#allocation5 + $0x2f8] sm:$0xff]  }
  0x4b   :  { %1306 = vmatprep.mubr.bf16.mxu0 %v356_v53  ;;  %1736 = vmatprep.subr.bf16.mxu1 %v1889_v54  ;;  %v1946_v52 = vld [vmem:[#allocation5 + $0x238] sm:$0xff]   ;;  %v368_v53 = vrot.slane %v52_v51, %v2111_v35  ;;  %v361_v54 = vcombine.high %v52_v51, %v52_v51 }
  0x4c   :  { %1346 = vmatprep.mubr.bf16.mxu1 %v360_v56  ;;  %v1947_v56 = vld [vmem:[#allocation5 + $0x2b8] sm:$0xff]  }
  0x4d   :  { %1715 = vmatpush3.bf16.msra.mxu0 %v1890_v55  ;;  %v1948_v55 = vld [vmem:[#allocation5 + $0x340] sm:$0xff]  }
  0x4e   :  { %1716 = vmatprep.subr.bf16.mxu0 %v1892_v57  ;;  %1737 = vmatpush3.bf16.msra.mxu1 %v1891_v58  ;;  %v376_v57 = vcombine.high %v368_v53, %v368_v53  ;;  %v384_v58 = vrot.slane %v368_v53, %v2111_v35 }
  0x4f   :  { %1738 = vmatprep.subr.bf16.mxu1 %v1893_v59  ;;  %v2127_v59 = vrot.slane %v361_v54, %v2111_v35 }
  0x51   :  { %1717 = vmatpush3.bf16.msra.mxu0 %v1894_v60  ;;  %v1949_v60 = vld [vmem:[#allocation5 + $0x3c0] sm:$0xff]  }
  0x52   :  { %1718 = vmatprep.subr.bf16.mxu0 %v1896_v61  ;;  %1739 = vmatpush3.bf16.msra.mxu1 %v1895_v62  ;;  %v398_v61 = vrot.slane %v376_v57, %v2111_v35  ;;  %v1950_v62 = vld [vmem:[#allocation5 + $0x300] sm:$0xff]  }
  0x53   :  { %1740 = vmatprep.subr.bf16.mxu1 %v1897_v63  ;;  %v377_v63 = vcombine.high %v2127_v59, %v2127_v59 }
  0x55   :  { %1719 = vmatpush3.bf16.msra.mxu0 %v1898_v0  ;;  %v406_v0 = vcombine.high %v384_v58, %v384_v58 }
  0x56   :  { %1720 = vmatprep.subr.bf16.mxu0 %v1900_v1  ;;  %1741 = vmatpush3.bf16.msra.mxu1 %v1899_v2  ;;  %v1952_v1 = vld [vmem:[#allocation5 + $0x348] sm:$0xff]   ;;  %v408_v2 = vcombine.high %v398_v61, %v398_v61 }
  0x57   :  { %1742 = vmatprep.subr.bf16.mxu1 %v1901_v3  ;;  %v1951_v3 = vld [vmem:[#allocation5 + $0x380] sm:$0xff]  }
  0x59   :  { %1721 = vmatpush3.bf16.msra.mxu0 %v1902_v4  ;;  %v405_v4 = vrot.slane %v377_v63, %v2111_v35 }
  0x5a   :  { %1722 = vmatprep.subr.bf16.mxu0 %v1904_v5  ;;  %1743 = vmatpush3.bf16.msra.mxu1 %v1903_v6  ;;  %v1953_v5 = vld [vmem:[#allocation5 + $0x3c8] sm:$0xff]  }
  0x5b   :  { %1744 = vmatprep.subr.bf16.mxu1 %v1905_v7  ;;  %v1954_v6 = vld [vmem:[#allocation5 + $0x308] sm:$0xff]   ;;  %v409_v7 = vcombine.high %v405_v4, %v405_v4 }
  0x5d   :  { %1723 = vmatpush3.bf16.msra.mxu0 %v1906_v8  ;;  %v1956_v8 = vld [vmem:[#allocation5 + $0x350] sm:$0xff]  }
  0x5e   :  { %1724 = vmatprep.subr.bf16.mxu0 %v1908_v9  ;;  %1745 = vmatpush3.bf16.msra.mxu1 %v1907_v10  ;;  %v1955_v9 = vld [vmem:[#allocation5 + $0x388] sm:$0xff]   ;;  %v1957_v10 = vld [vmem:[#allocation5 + $0x3d0] sm:$0xff]  }
  0x5f   :  { %1746 = vmatprep.subr.bf16.mxu1 %v1909_v11  ;;  %v1958_v11 = vld [vmem:[#allocation5 + $0x310] sm:$0xff]  }
  0x61   :  { %1725 = vmatpush3.bf16.msra.mxu0 %v1910_v12  ;;  %v1960_v12 = vld [vmem:[#allocation5 + $0x358] sm:$0xff]  }
  0x62   :  { %1726 = vmatprep.subr.bf16.mxu0 %v1912_v13  ;;  %1747 = vmatpush3.bf16.msra.mxu1 %v1911_v14  ;;  %v1959_v13 = vld [vmem:[#allocation5 + $0x390] sm:$0xff]   ;;  %v1961_v14 = vld [vmem:[#allocation5 + $0x3d8] sm:$0xff]  }
  0x63   :  { %1748 = vmatprep.subr.bf16.mxu1 %v1913_v15  ;;  %v1962_v15 = vld [vmem:[#allocation5 + $0x318] sm:$0xff]  }
  0x65   :  { %1727 = vmatpush3.bf16.msra.mxu0 %v1914_v16  ;;  %v1964_v16 = vld [vmem:[#allocation5 + $0x360] sm:$0xff]  }
  0x66   :  { %1756 = vmatprep.subr.bf16.mxu0 %v1916_v18  ;;  %1749 = vmatpush3.bf16.msra.mxu1 %v1915_v19  ;;  %v1965_v18 = vld [vmem:[#allocation5 + $0x3e0] sm:$0xff]  }
  0x67   :  { %1778 = vmatprep.subr.bf16.mxu1 %v1917_v20  ;;  %v1966_v19 = vld [vmem:[#allocation5 + $0x320] sm:$0xff]   ;;  %v1968_v20 = vld [vmem:[#allocation5 + $0x368] sm:$0xff]  }
  0x68   :  { %1307 = vmatmul.mubr.bf16.vlgmr.msra.gmra.mrb[4].mxu0 %v342_v17  ;;  %v1963_v17 = vld [vmem:[#allocation5 + $0x398] sm:$0xff]  }
  0x69   :  { %1757 = vmatpush3.bf16.msra.mxu0 %v1918_v21  ;;  %1347 = vmatmul.mubr.bf16.vlgmr.msra.gmra.mrb[4].mxu1 %v358_v22  ;;  %v1967_v21 = vld [vmem:[#allocation5 + $0x3a0] sm:$0xff]   ;;  %v1969_v22 = vld [vmem:[#allocation5 + $0x3e8] sm:$0xff]  }
  0x6a   :  { %1758 = vmatprep.subr.bf16.mxu0 %v1920_v23  ;;  %1779 = vmatpush3.bf16.msra.mxu1 %v1919_v24  ;;  %v1970_v23 = vld [vmem:[#allocation5 + $0x328] sm:$0xff]   ;;  %v1972_v24 = vld [vmem:[#allocation5 + $0x370] sm:$0xff]  }
  0x6b   :  { %1780 = vmatprep.subr.bf16.mxu1 %v1921_v25  ;;  %1386 = vmatprep.mubr.bf16.mxu0 %v398_v61  ;;  %v1971_v25 = vld [vmem:[#allocation5 + $0x3a8] sm:$0xff]  }
  0x6c   :  { %1426 = vmatprep.mubr.bf16.mxu1 %v408_v2 }
  0x6d   :  { %1759 = vmatpush3.bf16.msra.mxu0 %v1922_v26  ;;  %v1973_v26 = vld [vmem:[#allocation5 + $0x3f0] sm:$0xff]  }
  0x6e   :  { %1760 = vmatprep.subr.bf16.mxu0 %v1924_v27  ;;  %1781 = vmatpush3.bf16.msra.mxu1 %v1923_v28  ;;  %v1974_v27 = vld [vmem:[#allocation5 + $0x330] sm:$0xff]   ;;  %v1976_v28 = vld [vmem:[#allocation5 + $0x378] sm:$0xff]  }
  0x6f   :  { %1782 = vmatprep.subr.bf16.mxu1 %v1925_v29  ;;  %v1975_v29 = vld [vmem:[#allocation5 + $0x3b0] sm:$0xff]  }
  0x71   :  { %1761 = vmatpush3.bf16.msra.mxu0 %v1926_v30  ;;  %v1977_v30 = vld [vmem:[#allocation5 + $0x3f8] sm:$0xff]  }
  0x72   :  { %1762 = vmatprep.subr.bf16.mxu0 %v1928_v31  ;;  %1783 = vmatpush3.bf16.msra.mxu1 %v1927_v32  ;;  %v1978_v31 = vld [vmem:[#allocation5 + $0x338] sm:$0xff]   ;;  %v391_v32 = vrot.slane %v2127_v59, %v2111_v35 }
  0x73   :  { %1784 = vmatprep.subr.bf16.mxu1 %v1929_v33  ;;  %v1979_v33 = vld [vmem:[#allocation5 + $0x3b8] sm:$0xff]  }
  0x75   :  { %1763 = vmatpush3.bf16.msra.mxu0 %v1930_v34  ;;  %v407_v34 = vcombine.high %v391_v32, %v391_v32 }
  0x76   :  { %1764 = vmatprep.subr.bf16.mxu0 %v1932_v36  ;;  %1785 = vmatpush3.bf16.msra.mxu1 %v1931_v37  ;;  %v2058_v36 = vmov 0.0  }
  0x77   :  { %1786 = vmatprep.subr.bf16.mxu1 %v1933_v38  ;;  %46 = vst [vmem:[#allocation7] sm:$0x1] %v2058_v36 }
  0x79   :  { %1765 = vmatpush3.bf16.msra.mxu0 %v1934_v39 }
  0x7a   :  { %1766 = vmatprep.subr.bf16.mxu0 %v1936_v40  ;;  %1787 = vmatpush3.bf16.msra.mxu1 %v1935_v41 }
  0x7b   :  { %1788 = vmatprep.subr.bf16.mxu1 %v1937_v42 }
  0x7d   :  { %1767 = vmatpush3.bf16.msra.mxu0 %v1938_v43 }
  0x7e   :  { %1768 = vmatprep.subr.bf16.mxu0 %v1940_v44  ;;  %1789 = vmatpush3.bf16.msra.mxu1 %v1939_v45 }
  0x7f   :  { %1790 = vmatprep.subr.bf16.mxu1 %v1941_v46 }
  0x81   :  { %1769 = vmatpush3.bf16.msra.mxu0 %v1942_v47 }
  0x82   :  { %1770 = vmatprep.subr.bf16.mxu0 %v1944_v48  ;;  %1791 = vmatpush3.bf16.msra.mxu1 %v1943_v49 }
  0x83   :  { %1792 = vmatprep.subr.bf16.mxu1 %v1945_v50 }
  0x85   :  { %1771 = vmatpush3.bf16.msra.mxu0 %v1946_v52 }
  0x86   :  { %1800 = vmatprep.subr.bf16.mxu0 %v1948_v55  ;;  %1793 = vmatpush3.bf16.msra.mxu1 %v1947_v56 }
  0x87   :  { %1822 = vmatprep.subr.bf16.mxu1 %v1949_v60 }
  0x88   :  { %1387 = vmatmul.mubr.bf16.vlgmr.msra.gmra.mrb[8].mxu0 %v384_v58 }
  0x89   :  { %1801 = vmatpush3.bf16.msra.mxu0 %v1950_v62  ;;  %1427 = vmatmul.mubr.bf16.vlgmr.msra.gmra.mrb[8].mxu1 %v406_v0 }
  0x8a   :  { %1802 = vmatprep.subr.bf16.mxu0 %v1952_v1  ;;  %1823 = vmatpush3.bf16.msra.mxu1 %v1951_v3 }
  0x8b   :  { %1466 = vmatprep.mubr.bf16.mxu0 %v405_v4  ;;  %1824 = vmatprep.subr.bf16.mxu1 %v1953_v5 }
  0x8c   :  { %1506 = vmatprep.mubr.bf16.mxu1 %v409_v7 }
  0x8d   :  { %1803 = vmatpush3.bf16.msra.mxu0 %v1954_v6 }
  0x8e   :  { %1804 = vmatprep.subr.bf16.mxu0 %v1956_v8  ;;  %1825 = vmatpush3.bf16.msra.mxu1 %v1955_v9 }
  0x8f   :  { %1826 = vmatprep.subr.bf16.mxu1 %v1957_v10 }
  0x91   :  { %1805 = vmatpush3.bf16.msra.mxu0 %v1958_v11 }
  0x92   :  { %1806 = vmatprep.subr.bf16.mxu0 %v1960_v12  ;;  %1827 = vmatpush3.bf16.msra.mxu1 %v1959_v13 }
  0x93   :  { %1828 = vmatprep.subr.bf16.mxu1 %v1961_v14 }
  0x95   :  { %1807 = vmatpush3.bf16.msra.mxu0 %v1962_v15 }
  0x96   :  { %1808 = vmatprep.subr.bf16.mxu0 %v1964_v16  ;;  %1829 = vmatpush3.bf16.msra.mxu1 %v1963_v17  ;;  %v53_v17 = vld [vmem:[#allocation7] sm:$0x1] }
  0x97   :  { %1830 = vmatprep.subr.bf16.mxu1 %v1965_v18 }
  0x99   :  { %1809 = vmatpush3.bf16.msra.mxu0 %v1966_v19 }
  0x9a   :  { %1810 = vmatprep.subr.bf16.mxu0 %v1968_v20  ;;  %1831 = vmatpush3.bf16.msra.mxu1 %v1967_v21  ;;  %v1520_v21 = vld [vmem:[%s2152_s2] sm:$0x1] }
  0x9b   :  { %1832 = vmatprep.subr.bf16.mxu1 %v1969_v22 }
  0x9d   :  { %1811 = vmatpush3.bf16.msra.mxu0 %v1970_v23 }
  0x9e   :  { %1812 = vmatprep.subr.bf16.mxu0 %v1972_v24  ;;  %1833 = vmatpush3.bf16.msra.mxu1 %v1971_v25 }
  0x9f   :  { %1834 = vmatprep.subr.bf16.mxu1 %v1973_v26 }
  0xa1   :  { %1813 = vmatpush3.bf16.msra.mxu0 %v1974_v27 }
  0xa2   :  { %1814 = vmatprep.subr.bf16.mxu0 %v1976_v28  ;;  %1835 = vmatpush3.bf16.msra.mxu1 %v1975_v29 }
  0xa3   :  { %1836 = vmatprep.subr.bf16.mxu1 %v1977_v30 }
  0xa5   :  { %1815 = vmatpush3.bf16.msra.mxu0 %v1978_v31 }
  0xa6   :  { %1837 = vmatpush3.bf16.msra.mxu1 %v1979_v33 }
  0xa8   :  { %1467 = vmatmul.mubr.bf16.vlgmr.msra.gmra.mrb[12].mxu0 %v391_v32 }
  0xa9   :  { %1507 = vmatmul.mubr.bf16.vlgmr.msra.gmra.mrb[12].mxu1 %v407_v34 }
 0x11b   :  { %v1684_v37 = vpop.f32.mrb[0].mxu0 }
 0x11c   :  { %v1685_v38 = vpop.f32.mrb[1].mxu0  ;;  %v1706_v39 = vpop.f32.mrb[0].mxu1 }
 0x11d   :  { %v1686_v40 = vadd.f32 %v1685_v38, %v1684_v37  ;;  %v1687_v41 = vpop.f32.mrb[2].mxu0  ;;  %v1707_v42 = vpop.f32.mrb[1].mxu1 }
 0x11e   :  { %v1688_v43 = vpop.f32.mrb[3].mxu0  ;;  %v1708_v44 = vadd.f32 %v1707_v42, %v1706_v39  ;;  %v1709_v45 = vpop.f32.mrb[2].mxu1 }
 0x11f   :  { %v1710_v35 = vpop.f32.mrb[3].mxu1 }
 0x120   :  { %v1269_v46 = vadd.f32 %v1708_v44, %v1686_v40 }
 0x13b   :  { %v1728_v47 = vpop.f32.mrb[4].mxu0 }
 0x13c   :  { %v1729_v48 = vpop.f32.mrb[5].mxu0  ;;  %v1750_v49 = vpop.f32.mrb[4].mxu1 }
 0x13d   :  { %v1730_v50 = vadd.f32 %v1729_v48, %v1728_v47  ;;  %v1731_v51 = vpop.f32.mrb[6].mxu0  ;;  %v1751_v52 = vpop.f32.mrb[5].mxu1 }
 0x13e   :  { %v1732_v53 = vpop.f32.mrb[7].mxu0  ;;  %v1752_v55 = vadd.f32 %v1751_v52, %v1750_v49  ;;  %v1753_v56 = vpop.f32.mrb[6].mxu1 }
 0x13f   :  { %v1309_v54 = vadd.f32 %v1730_v50, %v1269_v46  ;;  %v1754_v57 = vpop.f32.mrb[7].mxu1 }
 0x141   :  { %v1349_v58 = vadd.f32 %v1752_v55, %v1309_v54 }
 0x15b   :  { %v1772_v59 = vpop.f32.mrb[8].mxu0 }
 0x15c   :  { %v1773_v60 = vpop.f32.mrb[9].mxu0  ;;  %v1794_v61 = vpop.f32.mrb[8].mxu1 }
 0x15d   :  { %v1774_v62 = vadd.f32 %v1773_v60, %v1772_v59  ;;  %v1775_v63 = vpop.f32.mrb[10].mxu0  ;;  %v1795_v0 = vpop.f32.mrb[9].mxu1 }
 0x15e   :  { %v1776_v1 = vpop.f32.mrb[11].mxu0  ;;  %v1796_v3 = vadd.f32 %v1795_v0, %v1794_v61  ;;  %v1797_v4 = vpop.f32.mrb[10].mxu1 }
 0x15f   :  { %v1389_v2 = vadd.f32 %v1774_v62, %v1349_v58  ;;  %v1798_v5 = vpop.f32.mrb[11].mxu1 }
 0x161   :  { %v1429_v6 = vadd.f32 %v1796_v3, %v1389_v2 }
 0x17b   :  { %v1816_v7 = vpop.f32.mrb[12].mxu0 }
 0x17c   :  { %v1817_v8 = vpop.f32.mrb[13].mxu0  ;;  %v1838_v9 = vpop.f32.mrb[12].mxu1 }
 0x17d   :  { %v1818_v10 = vadd.f32 %v1817_v8, %v1816_v7  ;;  %v1819_v11 = vpop.f32.mrb[14].mxu0  ;;  %v1839_v12 = vpop.f32.mrb[13].mxu1 }
 0x17e   :  { %v1820_v13 = vpop.f32.mrb[15].mxu0  ;;  %v1840_v15 = vadd.f32 %v1839_v12, %v1838_v9  ;;  %v1841_v16 = vpop.f32.mrb[14].mxu1 }
 0x17f   :  { %v1469_v14 = vadd.f32 %v1818_v10, %v1429_v6  ;;  %v1842_v18 = vpop.f32.mrb[15].mxu1 }
 0x181   :  { %v1509_v19 = vadd.f32 %v1840_v15, %v1469_v14 }
 0x183   :  { %v1514_v20 = vadd.f32 %v1509_v19, %v53_v17 }
 0x185   :  { %1515 = vst [vmem:[#allocation7] sm:$0x1] %v1514_v20 }
 0x18c   :  { %v1519_v22 = vld [vmem:[#allocation7] sm:$0x1] }
 0x18d   :  { %v1521_v23 = vmul.f32 %v1520_v21, %v1519_v22 }
 0x18f   :  { %1522 = vst [vmem:[#allocation7] sm:$0x1] %v1521_v23 }
 0x190   :  { %2036 = shalt.err (!%p2033_p6)
}
 0x191   :  { %s2037_s17 = scalar_lea.hbm %s2153_s3, 16 }
 0x192   :  { %p2038_p7 = scmp.ne.s32.totalorder %s2153_s3, %s2037_s17  ;;  %p2041_p8 = scmp.lt.u32.totalorder %s2037_s17, %s2153_s3 }
 0x194   :  { %p2043_p9 = pnand %p2041_p8, %p2038_p7 }
 0x196   :  { %2046 = shalt.err (!%p2043_p9)
}
 0x197   :  { %1532 = dma.vmem_to_hbm [thread:$0]  %s1530_s12, 16, %s2153_s3, [#allocation4]  }
 0x198   :  { %2051 = dma.done.wait [#allocation4], 16  }
 0x199   :  { %2052 = vsyncadd [#allocation4], 4294967280 }
 0x19a   :  { %1536 = vsyncpa [#allocation3], 1 }
 0x19b   :  { %1537 = vsyncpa [#allocation6], 1 }
 0x19c   :  { %1538 = vsyncpa [#allocation4], 1 }

</bundles_post_ra>
